<compile_context>
chip_gen: v7x
topology: tpu7x:2x2x1
jax: 0.10.0
libtpu: 0.0.40
codegen_flags: <defaults>
</compile_context>

<pallas_src>
import functools

import jax
import jax.numpy as jnp
from jax.experimental import pallas as pl
from jax.experimental.pallas import tpu as pltpu


def _adain_kernel(x_ref, gp1_ref, beta_ref, o_ref, *, eps: float, hw_true: int):
    # x_ref   : (Bt, Ct, HWp)  channels on sublanes, flattened spatial on lanes
    # gp1_ref : (Bt, Ct, 1)    precomputed (1 + gamma)
    # beta_ref: (Bt, Ct, 1)
    # o_ref   : (Bt, Ct, HWp)
    x = x_ref[...].astype(jnp.float32)
    hwp = x.shape[-1]
    inv_n = jnp.float32(1.0 / hw_true)

    if hwp == hw_true:
        # No spatial padding: plain two-pass mean/var over the lane axis.
        mean = jnp.mean(x, axis=-1, keepdims=True)
        diff = x - mean
        var = jnp.mean(diff * diff, axis=-1, keepdims=True)
    else:
        # Spatial axis is zero-padded to a lane multiple of 128: zeros do not
        # perturb the sum, and the second moment masks the padded lanes.
        lane = jax.lax.broadcasted_iota(jnp.int32, x.shape, dimension=2)
        valid = lane < hw_true
        mean = jnp.sum(x, axis=-1, keepdims=True) * inv_n
        diff = jnp.where(valid, x - mean, 0.0)
        var = jnp.sum(diff * diff, axis=-1, keepdims=True) * inv_n

    xn = (x - mean) * jax.lax.rsqrt(var + eps)
    o_ref[...] = (gp1_ref[...] * xn + beta_ref[...]).astype(o_ref.dtype)


def _divisors(n):
    return [d for d in range(1, n + 1) if n % d == 0]


def _choose_tiles(B, Cp, HWp, itemsize, sub, target_bytes=2 * 1024 * 1024):
    """Pick (Bt, Ct): blocks near ~target_bytes, channel-tiled for big maps."""
    # Channel tile: largest divisor of Cp that is a multiple of `sub` and keeps
    # one (1, Ct, HWp) slab under target (at least `sub`).
    ct = sub
    for d in _divisors(Cp):
        if d % sub == 0 and d * HWp * itemsize <= target_bytes:
            ct = max(ct, d)
    # Batch tile: largest divisor of B keeping the full block under target.
    bt = 1
    for d in _divisors(B):
        if d * ct * HWp * itemsize <= target_bytes:
            bt = max(bt, d)
    # Keep >=2 grid steps when possible so both v7x TensorCores get work
    # (no-op on single-TC v5e/v6e).
    if bt == B and ct == Cp and B >= 2:
        bt = max(d for d in _divisors(B) if d < B)
    return bt, ct


def adain_pallas(x, s, fc_w, fc_b, *, eps: float = 1e-5):
    """x: (B, C, H, W) NCHW, s: (B, S), fc_w: (2C, S), fc_b: (2C,)."""
    B, C, H, W = x.shape
    HW = H * W

    # ---- style FC hoisted out of the kernel (single batched matmul) ----
    h = (s @ fc_w.T + fc_b).astype(jnp.float32)          # (B, 2C)
    gp1 = 1.0 + h[:, :C]                                  # (B, C)  = 1 + gamma
    beta = h[:, C:]                                       # (B, C)

    # ---- lane/sublane-dense padding ----
    itemsize = jnp.dtype(x.dtype).itemsize
    sub = {4: 8, 2: 16, 1: 32}.get(itemsize, 8)           # sublane multiple
    Cp = -(-C // sub) * sub
    HWp = -(-HW // 128) * 128                             # lane multiple

    x2 = x.reshape(B, C, HW)
    if Cp != C or HWp != HW:
        x2 = jnp.pad(x2, ((0, 0), (0, Cp - C), (0, HWp - HW)))
    if Cp != C:
        gp1 = jnp.pad(gp1, ((0, 0), (0, Cp - C)), constant_values=1.0)
        beta = jnp.pad(beta, ((0, 0), (0, Cp - C)))
    gp1 = gp1[:, :, None]                                 # (B, Cp, 1)
    beta = beta[:, :, None]                               # (B, Cp, 1)

    # ---- tiling ----
    Bt, Ct = _choose_tiles(B, Cp, HWp, itemsize, sub)
    grid = (B // Bt, Cp // Ct)

    kernel = functools.partial(_adain_kernel, eps=eps, hw_true=HW)

    out = pl.pallas_call(
        kernel,
        out_shape=jax.ShapeDtypeStruct((B, Cp, HWp), x.dtype),
        grid_spec=pltpu.PrefetchScalarGridSpec(
            num_scalar_prefetch=0,
            grid=grid,
            in_specs=[
                pl.BlockSpec((Bt, Ct, HWp), lambda b, c: (b, c, 0)),  # x
                pl.BlockSpec((Bt, Ct, 1), lambda b, c: (b, c, 0)),    # 1+gamma
                pl.BlockSpec((Bt, Ct, 1), lambda b, c: (b, c, 0)),    # beta
            ],
            out_specs=pl.BlockSpec((Bt, Ct, HWp), lambda b, c: (b, c, 0)),
        ),
        compiler_params=pltpu.CompilerParams(
            dimension_semantics=("parallel", "parallel")),
    )(x2, gp1, beta)

    return out[:, :C, :HW].reshape(B, C, H, W)


def adain_ref(x, s, fc_w, fc_b, eps=1e-5):
    """Pure-JAX reference of the PyTorch forward (training-mode stats)."""
    h = s @ fc_w.T + fc_b                       # (B, 2C)
    C = x.shape[1]
    gamma = h[:, :C][:, :, None, None]
    beta = h[:, C:][:, :, None, None]
    mean = jnp.mean(x, axis=(2, 3), keepdims=True)
    var = jnp.mean((x - mean) ** 2, axis=(2, 3), keepdims=True)
    xn = (x - mean) / jnp.sqrt(var + eps)
    return (1.0 + gamma) * xn + beta


if __name__ == "__main__":
    # Module hyper-params (small, consistent with the forward signature).
    B, C, H, W = 2, 4, 16, 16          # x: NCHW
    STYLE_DIM = 32                     # s: (B, style_dim)

    key = jax.random.PRNGKey(0)
    kx, ks, kw, kb = jax.random.split(key, 4)

    x = jax.random.normal(kx, (B, C, H, W), dtype=jnp.float32)
    s = jax.random.normal(ks, (B, STYLE_DIM), dtype=jnp.float32)

    # Deterministic synthetic params for nn.Linear(style_dim, 2*C).
    fc_w = jax.random.normal(kw, (2 * C, STYLE_DIM), dtype=jnp.float32) * 0.1
    fc_b = jax.random.normal(kb, (2 * C,), dtype=jnp.float32) * 0.1

    out = adain_pallas(x, s, fc_w, fc_b)
    out = jax.block_until_ready(out)

    ref = adain_ref(x, s, fc_w, fc_b)
    assert out.shape == (B, C, H, W)
    assert jnp.allclose(out, ref, atol=1e-4, rtol=1e-4), "mismatch vs reference"

    # TODO(synk): running_mean/running_var buffer updates (track_running_stats
    # side effect) are not modeled; forward uses batch stats as in training.

    print("KERNEL_OK")
</pallas_src>

<mosaic_0001>
module attributes {stable_mosaic.version = 11 : i64} {
  func.func @_adain_kernel(%arg0: i32, %arg1: i32, %arg2: memref<1x8x256xf32, #tpu.memory_space<vmem>>, %arg3: memref<1x8x1xf32, #tpu.memory_space<vmem>>, %arg4: memref<1x8x1xf32, #tpu.memory_space<vmem>>, %arg5: memref<1x8x256xf32, #tpu.memory_space<vmem>>) attributes {dimension_semantics = [#tpu.dimension_semantics<parallel>, #tpu.dimension_semantics<parallel>], iteration_bounds = array<i64: 2, 1>, scalar_prefetch = 0 : i64, scratch_operands = 0 : i64, tpu.core_type = #tpu.core_type<tc>, window_params = [{transform_indices = @transform_0, window_bounds = array<i64: 1, 8, 256>}, {transform_indices = @transform_1, window_bounds = array<i64: 1, 8, 1>}, {transform_indices = @transform_2, window_bounds = array<i64: 1, 8, 1>}, {transform_indices = @transform_3, window_bounds = array<i64: 1, 8, 256>}]} {
    %c0 = arith.constant 0 : index
    %c0_0 = arith.constant 0 : index
    %c0_1 = arith.constant 0 : index
    %0 = vector.load %arg2[%c0, %c0_0, %c0_1] : memref<1x8x256xf32, #tpu.memory_space<vmem>>, vector<1x8x256xf32>
    %cst = arith.constant dense<0.000000e+00> : vector<1x8xf32>
    %1 = vector.multi_reduction <add>, %0, %cst [2] : vector<1x8x256xf32> to vector<1x8xf32>
    %2 = vector.shape_cast %1 : vector<1x8xf32> to vector<1x8x1xf32>
    %cst_2 = arith.constant 2.560000e+02 : f32
    %3 = vector.broadcast %cst_2 : f32 to vector<1x8x1xf32>
    %4 = arith.divf %2, %3 : vector<1x8x1xf32>
    %5 = vector.broadcast %4 : vector<1x8x1xf32> to vector<1x8x256xf32>
    %6 = arith.subf %0, %5 : vector<1x8x256xf32>
    %7 = arith.mulf %6, %6 : vector<1x8x256xf32>
    %cst_3 = arith.constant dense<0.000000e+00> : vector<1x8xf32>
    %8 = vector.multi_reduction <add>, %7, %cst_3 [2] : vector<1x8x256xf32> to vector<1x8xf32>
    %9 = vector.shape_cast %8 : vector<1x8xf32> to vector<1x8x1xf32>
    %cst_4 = arith.constant 2.560000e+02 : f32
    %10 = vector.broadcast %cst_4 : f32 to vector<1x8x1xf32>
    %11 = arith.divf %9, %10 : vector<1x8x1xf32>
    %12 = vector.broadcast %4 : vector<1x8x1xf32> to vector<1x8x256xf32>
    %13 = arith.subf %0, %12 : vector<1x8x256xf32>
    %cst_5 = arith.constant 9.99999974E-6 : f32
    %14 = vector.broadcast %cst_5 : f32 to vector<1x8x1xf32>
    %15 = arith.addf %11, %14 : vector<1x8x1xf32>
    %16 = math.rsqrt %15 : vector<1x8x1xf32>
    %17 = vector.broadcast %16 : vector<1x8x1xf32> to vector<1x8x256xf32>
    %18 = arith.mulf %13, %17 : vector<1x8x256xf32>
    %c0_6 = arith.constant 0 : index
    %c0_7 = arith.constant 0 : index
    %c0_8 = arith.constant 0 : index
    %19 = vector.load %arg3[%c0_6, %c0_7, %c0_8] : memref<1x8x1xf32, #tpu.memory_space<vmem>>, vector<1x8x1xf32>
    %20 = vector.broadcast %19 : vector<1x8x1xf32> to vector<1x8x256xf32>
    %21 = arith.mulf %20, %18 : vector<1x8x256xf32>
    %c0_9 = arith.constant 0 : index
    %c0_10 = arith.constant 0 : index
    %c0_11 = arith.constant 0 : index
    %22 = vector.load %arg4[%c0_9, %c0_10, %c0_11] : memref<1x8x1xf32, #tpu.memory_space<vmem>>, vector<1x8x1xf32>
    %23 = vector.broadcast %22 : vector<1x8x1xf32> to vector<1x8x256xf32>
    %24 = arith.addf %21, %23 : vector<1x8x256xf32>
    %c0_12 = arith.constant 0 : index
    %c0_13 = arith.constant 0 : index
    %c0_14 = arith.constant 0 : index
    %25 = vector.load %arg5[%c0_12, %c0_13, %c0_14] : memref<1x8x256xf32, #tpu.memory_space<vmem>>, vector<1x8x256xf32>
    tpu.vector_store %arg5[%c0_12, %c0_13, %c0_14], %24 {strides = array<i32>} : memref<1x8x256xf32, #tpu.memory_space<vmem>>, vector<1x8x256xf32>,
    return
  }
  func.func @transform_0(%arg0: i32, %arg1: i32) -> (i32, i32, i32) {
    %c0_i32 = arith.constant 0 : i32
    %c0_i32_0 = arith.constant 0 : i32
    return %arg0, %arg1, %c0_i32 : i32, i32, i32
  }
  func.func @transform_1(%arg0: i32, %arg1: i32) -> (i32, i32, i32) {
    %c0_i32 = arith.constant 0 : i32
    %c0_i32_0 = arith.constant 0 : i32
    return %arg0, %arg1, %c0_i32 : i32, i32, i32
  }
  func.func @transform_2(%arg0: i32, %arg1: i32) -> (i32, i32, i32) {
    %c0_i32 = arith.constant 0 : i32
    %c0_i32_0 = arith.constant 0 : i32
    return %arg0, %arg1, %c0_i32 : i32, i32, i32
  }
  func.func @transform_3(%arg0: i32, %arg1: i32) -> (i32, i32, i32) {
    %c0_i32 = arith.constant 0 : i32
    %c0_i32_0 = arith.constant 0 : i32
    return %arg0, %arg1, %c0_i32 : i32, i32, i32
  }
}

</mosaic_0001>

<bundles_post_ra>
// kernel: tpu_custom_call.1
= control target key start
LH: loop header
LB: loop body
LE: loop exit
PB: predicated region body
PF: predicated region fallthrough
CT: control target
= control target key end

     0   :  { %8 = vsyncpa [#allocation3], 0  ;;  %s713_s0 = inlined_call_operand.vmem [shape: f32[2,8,256], index: 0, kind: input, shape index: {}]   ;;  %s714_s1 = inlined_call_operand.vmem [shape: f32[2,8,1], index: 1, kind: input, shape index: {}]   ;;  %s715_s2 = inlined_call_operand.vmem [shape: f32[2,8,1], index: 2, kind: input, shape index: {}]   ;;  %s716_s3 = inlined_call_operand.hbm [shape: f32[2,8,256], index: 3, kind: output, shape index: {}]  }
   0x1   :  { %10 = vsyncpa [#allocation3 + $0x1], 0  ;;  %s595_s12 = smov 0   ;;  %s597_s13 = smov 0  }
   0x2   :  { %s599_s14 = smov 0   ;;  %s601_s15 = smov 0  }
   0x3   :  { %s603_s16 = smov 0   ;;  %s605_s17 = smov 0  }
   0x4 LB: > { %s416_s18 = sadd.s32 4294967295, %s571_s17   ;;  %s417_s19 = sadd.s32 4294967294, %s571_s17   ;;  %s571_s17 = sphi %s605_s17, %s16_s17   ;;  %s567_s16 = sphi %s603_s16, %s723_s16   ;;  %s563_s15 = sphi %s601_s15, %s722_s15   ;;  %s559_s14 = sphi %s599_s14, %s721_s14   ;;  %s555_s13 = sphi %s597_s13, %s720_s13   ;;  %s551_s12 = sphi %s595_s12, %s719_s12  }
   0x5   : > { %s28_s20 = sadd.s32 1, %s567_s16  ;;  %s121_s21 = sadd.s32 1, %s559_s14 }
   0x6   : > { %p30_p0 = scmp.ge.s32.totalorder %s28_s20, 2  ;;  %p131_p1 = scmp.ne.s32.totalorder %s559_s14, %s555_s13 }
   0x7   : > { %p132_p2 = scmp.eq.s32.totalorder %s416_s18, 1  ;;  %p137_p3 = scmp.ne.s32.totalorder %s555_s13, %s551_s12 }
   0x8   : > { %s725_s20 = smov (%p30_p0, %s28_s20), 0  ;;  %p138_p5 = scmp.eq.s32.totalorder %s417_s19, 1 }
   0x9   : > { %p635_p4 = por %p132_p2, %p131_p1  ;;  %s116_s23 = ssub.s32 %s567_s16, %s725_s20 }
   0xa   : > { %p420_p6 = scmp.ge.s32.totalorder %s571_s17, 1  ;;  %p119_p7 = scmp.eq.s32.totalorder %s116_s23, 0 }
   0xb   : > { %p642_p8 = por %p138_p5, %p137_p3  ;;  %p188_p9 = scmp.lt.s32.totalorder %s571_s17, 3 }
   0xc   : > { %s648_s25 = scalar_select %p119_p7, %s559_s14, %s121_s21  }
   0xd   : > { %p189_p10 = pnand %p420_p6, %p188_p9 }
   0xe   : > { %p230_p11 = scmp.lt.s32.totalorder (!%p189_p10), %s563_s15, 1  ;;  %v573_v3 = vmov (!%p189_p10), 0   ;;  %s227_s11 = sand.u32 (!%p189_p10), 1, %s555_s13  }
   0xf   : > { %192 = sbr.rel (%p189_p10) target bundleno = 356 (0x164), region = 32  ;;  %489 = vset.pattern.permute.xlu1 (!%p189_p10), %v573_v3  ;;  %490 = vset.pattern.permute.xlu0 (!%p189_p10), %v573_v3  ;;  %s421_s18 = sshll.u32 (!%p189_p10), %s227_s11, 4 }
  0x10   : > { %s432_s19 = sshll.u32 (!%p189_p10), %s563_s15, 8  ;;  %s229_s21 = scalar_lea.vmem (!%p189_p10), [#allocation2], %s421_s18 }
  0x11   : > { %s307_s23 = sshll.u32 (!%p189_p10), %s229_s21, 4  ;;  %s666_s28 = scalar_lea.hbm (!%p189_p10), %s716_s3, %s432_s19  ;;  %s668_s23 = int_to_ptr.vmem [resolvable:$true] %s307_s23 }
  0x12   : > { %s493_s29 = scalar_lea.vmem (!%p189_p10), %s668_s23, 256 }
  0x13   : > { %p494_p12 = scmp.ne.s32.totalorder (!%p189_p10), %s668_s23, %s493_s29 }
  0x15   : > { %p495_p13 = pnand (!%p189_p10), %p494_p12, %p635_p4 }
  0x16   : > { %s231_s26 = scalar_select %p230_p11, %s563_s15, 1 }
  0x17   : > { %s291_s15 = scalar_lea.sflag [#allocation3], %s227_s11  ;;  %p496_p0 = pneg %p495_p13 }
  0x18   : > { %s431_s27 = sshll.u32 %s231_s26, 4  ;;  %s424_s4 = sshll.u32 %s231_s26, 3 }
  0x19   : > { %s238_s30 = scalar_lea.vmem %s713_s0, %s431_s27  ;;  %s245_s7 = scalar_lea.vmem %s714_s1, %s424_s4 }
  0x1a   : > { %v253_v0 = vld [vmem:[%s238_s30] sm:$0xff]  ;;  %v254_v1 = vld [vmem:[%s238_s30 + $0x8] sm:$0xff]  ;;  %s252_s10 = scalar_lea.vmem %s715_s2, %s424_s4  ;;  %s574_s30 = smov [#allocation2]  }
  0x1b   : > { %v255_v2 = vadd.f32 %v254_v1, %v253_v0  ;;  %v272_v4 = vld [vmem:[%s245_s7] sm:$0xff]  ;;  %s497_s4 = sshll.u32 %s574_s30, 4  ;;  %s498_s4 = int_to_ptr.vmem [resolvable:$false] %s497_s4 }
  0x1c   : > { %275 = vperm.xlu1 %489, %v272_v4   ;;  %v280_v5 = vld [vmem:[%s252_s10] sm:$0xff]  ;;  %s499_s5 = scalar_lea.vmem %s498_s4, 512  ;;  %p500_p1 = scmp.lt.s32.totalorder %s668_s23, %s498_s4 }
  0x1d   : > { %256 = vadd.xlane.f32.xlu0 %v255_v2  ;;  %p501_p2 = scmp.lt.s32.totalorder %s499_s5, %s493_s29 }
  0x1f   : > { %p502_p3 = por %p501_p2, %p500_p1 }
  0x20   : > { %283 = vperm.xlu1 %489, %v280_v5  }
  0x21   : > { %p503_p5 = pnand %p502_p3, %p496_p0 }
  0x9b   : > { %v276_v16 = vpop.permute.xlu1 %275 }
  0x9f   : > { %v284_v22 = vpop.permute.xlu1 %283 }
  0xaa   : > { %v257_v6 = vpop.xlane.xlu0 %256 }
  0xab   : > { %v259_v7 = vmul.f32 0.00390625, %v257_v6 }
  0xad   : > { %v260_v8 = vsub.f32 %v253_v0, %v259_v7  ;;  %v261_v9 = vsub.f32 %v254_v1, %v259_v7 }
  0xaf   : > { %v262_v10 = vmul.f32 %v260_v8, %v260_v8  ;;  %v263_v11 = vmul.f32 %v261_v9, %v261_v9 }
  0xb1   : > { %v264_v12 = vadd.f32 %v263_v11, %v262_v10 }
  0xb3   : > { %265 = vadd.xlane.f32.xlu0 %v264_v12 }
 0x140   : > { %v266_v13 = vpop.xlane.xlu0 %265 }
 0x141   : > { %v267_v14 = vmul.f32 0.00390625, %v266_v13 }
 0x143   : > { %v268_v15 = vadd.f32 1e-05, %v267_v14 }
 0x145   : > { %491 = vrsqrt.f32 %v268_v15 }
 0x14f   : > { %v492_v17 = vpop.eup %491 }
 0x150   : > { %v270_v18 = vmul.f32 %v492_v17, %v260_v8  ;;  %v271_v19 = vmul.f32 %v492_v17, %v261_v9 }
 0x152   : > { %v278_v20 = vmul.f32 %v276_v16, %v270_v18  ;;  %v279_v21 = vmul.f32 %v276_v16, %v271_v19 }
 0x154   : > { %v286_v23 = vadd.f32 %v284_v22, %v278_v20  ;;  %v287_v24 = vadd.f32 %v284_v22, %v279_v21 }
 0x156   : > { %288 = vst [vmem:[%s229_s21] sm:$0xff] %v286_v23  ;;  %289 = vst [vmem:[%s229_s21 + $0x8] sm:$0xff] %v287_v24 }
 0x157   : > { %506 = shalt.err (!%p503_p5)
}
 0x158   : > { %s507_s6 = scalar_lea.hbm %s666_s28, 256  ;;  %s511_s9 = scalar_lea.hbm %s716_s3, 512 }
 0x159   : > { %p508_p6 = scmp.ne.s32.totalorder %s666_s28, %s507_s6  ;;  %p512_p10 = scmp.lt.u32.totalorder %s666_s28, %s716_s3 }
 0x15a   : > { %p513_p11 = scmp.lt.u32.totalorder %s511_s9, %s507_s6  ;;  %p515_p13 = scmp.lt.u32.totalorder %s507_s6, %s666_s28 }
 0x15b   : > { %p509_p7 = pnand %p508_p6, %p635_p4 }
 0x15c   : > { %p514_p12 = por %p513_p11, %p512_p10 }
 0x15d   : > { %p510_p9 = pneg %p509_p7 }
 0x15e   : > { %p516_p0 = por %p515_p13, %p514_p12 }
 0x160   : > { %p517_p1 = pnand %p516_p0, %p510_p9 }
 0x162   : > { %520 = shalt.err (!%p517_p1)
}
 0x163   : > { %433 = dma.vmem_to_hbm [thread:$0]  (%p635_p4), %s668_s23, 256, %s666_s28, %s291_s15  }
 0x164 PF: > { %p439_p2 = scmp.ge.s32.totalorder %s571_s17, 2  ;;  %s319_s18 = sand.u32 1, %s551_s12  }
 0x165   : > { %s320_s19 = scalar_lea.sflag [#allocation3], %s319_s18 }
 0x166   : > { %p436_p3 = pnand %p439_p2, %p642_p8 }
 0x168   : > { %546 = dma.done.wait (!%p436_p3), %s320_s19, 256  }
 0x169   : > { %548 = vsyncadd (!%p436_p3), %s320_s19, 4294967040  ;;  %s16_s17 = sadd.s32 1, %s571_s17   ;;  %s719_s12 = smov %s555_s13 }
 0x16a   : > { %p13_p5 = scmp.ge.s32.totalorder %s16_s17, 4   ;;  %s720_s13 = smov %s559_s14 }
 0x16b   : > { %s721_s14 = smov %s648_s25  ;;  %s722_s15 = smov %s567_s16 }
 0x16c   : > { %s723_s16 = smov %s725_s20  ;;  %15 = sbr.rel (!%p13_p5) target bundleno = 4 (0x4), region = 73 }
 0x173   :  { %325 = vsyncpa [#allocation3], 1 }
 0x174   :  { %327 = vsyncpa [#allocation3 + $0x1], 1 }

</bundles_post_ra>
